<compile_context>
chip_gen: v7x
topology: tpu7x:2x2x1
jax: 0.10.0
libtpu: 0.0.40
codegen_flags: <defaults>
</compile_context>

<pallas_src>
import jax
import jax.numpy as jnp
from jax.experimental import pallas as pl
from jax.experimental.pallas import tpu as pltpu

# ---------------- problem sizes (small, consistent with the module) --------
B = 2               # batch
C_IN = 4            # input channels
H = 16              # spatial
W = 16
C_OUT = 32          # visual_feature_size (channel dim of backbone output)
KH = KW = 3         # conv kernel
K = KH * KW * C_IN  # 36  = im2col contraction depth
HW = H * W          # 256
M = B * HW          # 512 = fused matmul M dimension (batch folded into rows)


# ---------------------------- Pallas kernel --------------------------------
def conv_relu_gap_kernel(lhs_ref, w_ref, b_ref, o_ref):
    """Single-step kernel: one MXU matmul + bias + ReLU + global-avg-pool.

    lhs_ref : (M, K)       im2col patches, all batch elements stacked along M
    w_ref   : (K, C_OUT)   flattened conv weights
    b_ref   : (1, C_OUT)   conv bias
    o_ref   : (B, C_OUT)   pooled (flattened) backbone features
    """
    acc = jnp.dot(lhs_ref[...], w_ref[...],
                  preferred_element_type=jnp.float32)            # (M, C_OUT)
    acc = jnp.maximum(acc + b_ref[...], 0.0)                     # bias + ReLU
    # Global average pool per batch element.  The reshape is layout-free
    # (last dim unchanged, HW=256 divisible by 8); a single reduction chain
    # replaces B separate slice-reductions + concat.
    # (If B/HW scale, this reduction can move onto the MXU as P @ acc with a
    #  precomputed (B, M) 1/HW block matrix.)
    o_ref[...] = jnp.mean(acc.reshape(B, HW, C_OUT), axis=1)     # (B, C_OUT)


# ------------------------------ wrapper -------------------------------------
@jax.jit
def image_model_forward(x_nchw, weight, bias):
    """Image_Model.forward with the synthetic conv backbone.

    x_nchw : (B, C_IN, H, W) float32  (PyTorch NCHW convention)
    weight : (KH, KW, C_IN, C_OUT)
    bias   : (C_OUT,)
    returns: (B, C_OUT) -- flattened backbone features
    """
    # --- glue (fused under jax.jit): NCHW -> NHWC, SAME pad, im2col ---------
    x = jnp.transpose(x_nchw, (0, 2, 3, 1)).astype(jnp.float32)        # NHWC
    x = jnp.pad(x, ((0, 0), (1, 1), (1, 1), (0, 0)))                   # pad=1
    patches = [x[:, kh:kh + H, kw:kw + W, :]                           # 9 taps
               for kh in range(KH) for kw in range(KW)]
    lhs = jnp.concatenate(patches, axis=-1).reshape(M, K)              # (512, 36)
    w2d = weight.reshape(K, C_OUT).astype(jnp.float32)                 # (36, 32)
    b2d = bias.reshape(1, C_OUT).astype(jnp.float32)

    out = pl.pallas_call(
        conv_relu_gap_kernel,
        out_shape=jax.ShapeDtypeStruct((B, C_OUT), jnp.float32),
        in_specs=[
            pl.BlockSpec(memory_space=pltpu.MemorySpace.VMEM),
            pl.BlockSpec(memory_space=pltpu.MemorySpace.VMEM),
            pl.BlockSpec(memory_space=pltpu.MemorySpace.VMEM),
        ],
        out_specs=pl.BlockSpec(memory_space=pltpu.MemorySpace.VMEM),
    )(lhs, w2d, b2d)

    # x.view(x.size(0), -1): backbone output is (B, C_OUT, 1, 1) -> (B, C_OUT)
    return out


# ------------------------------ reference -----------------------------------
def _reference(x_nchw, weight, bias):
    x_nhwc = jnp.transpose(x_nchw, (0, 2, 3, 1)).astype(jnp.float32)
    y = jax.lax.conv_general_dilated(
        x_nhwc, weight.astype(jnp.float32),
        window_strides=(1, 1), padding="SAME",
        dimension_numbers=("NHWC", "HWIO", "NHWC"),
    ) + bias.reshape(1, 1, 1, C_OUT)
    y = jnp.maximum(y, 0.0)
    return jnp.mean(y, axis=(1, 2))          # (B, C_OUT)


# -------------------------------- main ---------------------------------------
if __name__ == "__main__":
    key = jax.random.PRNGKey(0)
    kx, kw, kb = jax.random.split(key, 3)

    x = jax.random.normal(kx, (B, C_IN, H, W), dtype=jnp.float32)      # NCHW
    weight = jax.random.normal(kw, (KH, KW, C_IN, C_OUT), jnp.float32) * 0.1
    bias = jax.random.normal(kb, (C_OUT,), jnp.float32) * 0.1

    feats = image_model_forward(x, weight, bias)
    feats = jax.block_until_ready(feats)

    ref = _reference(x, weight, bias)
    assert feats.shape == (B, C_OUT)
    assert jnp.allclose(feats, ref, atol=1e-4, rtol=1e-4), "mismatch vs reference"

    print("KERNEL_OK")
</pallas_src>

<mosaic_0001>
module attributes {stable_mosaic.version = 11 : i64} {
  func.func @conv_relu_gap_kernel(%arg0: memref<512x36xf32, #tpu.memory_space<vmem>>, %arg1: memref<36x32xf32, #tpu.memory_space<vmem>>, %arg2: memref<1x32xf32, #tpu.memory_space<vmem>>, %arg3: memref<2x32xf32, #tpu.memory_space<vmem>>) attributes {dimension_semantics = [], scalar_prefetch = 0 : i64, scratch_operands = 0 : i64, tpu.core_type = #tpu.core_type<tc>} {
    %c0 = arith.constant 0 : index
    %c0_0 = arith.constant 0 : index
    %0 = vector.load %arg0[%c0, %c0_0] : memref<512x36xf32, #tpu.memory_space<vmem>>, vector<512x36xf32>
    %c0_1 = arith.constant 0 : index
    %c0_2 = arith.constant 0 : index
    %1 = vector.load %arg1[%c0_1, %c0_2] : memref<36x32xf32, #tpu.memory_space<vmem>>, vector<36x32xf32>
    %cst = arith.constant dense<0.000000e+00> : vector<512x32xf32>
    %2 = tpu.matmul %0, %1, %cst {dimension_numbers = #tpu.dot_dimension_numbers<[1], [0], [0], [1], [0, 0, 1, 1], [], []>} : vector<512x36xf32>, vector<36x32xf32>, vector<512x32xf32> -> vector<512x32xf32>
    %c0_3 = arith.constant 0 : index
    %c0_4 = arith.constant 0 : index
    %3 = vector.load %arg2[%c0_3, %c0_4] : memref<1x32xf32, #tpu.memory_space<vmem>>, vector<1x32xf32>
    %4 = vector.broadcast %3 : vector<1x32xf32> to vector<512x32xf32>
    %5 = arith.addf %2, %4 : vector<512x32xf32>
    %cst_5 = arith.constant 0.000000e+00 : f32
    %6 = vector.broadcast %cst_5 : f32 to vector<512x32xf32>
    %7 = arith.maximumf %5, %6 : vector<512x32xf32>
    %8 = vector.shape_cast %7 : vector<512x32xf32> to vector<2x256x32xf32>
    %cst_6 = arith.constant dense<0.000000e+00> : vector<2x32xf32>
    %9 = vector.multi_reduction <add>, %8, %cst_6 [1] : vector<2x256x32xf32> to vector<2x32xf32>
    %cst_7 = arith.constant 2.560000e+02 : f32
    %10 = vector.broadcast %cst_7 : f32 to vector<2x32xf32>
    %11 = arith.divf %9, %10 : vector<2x32xf32>
    %c0_8 = arith.constant 0 : index
    %c0_9 = arith.constant 0 : index
    %12 = vector.load %arg3[%c0_8, %c0_9] : memref<2x32xf32, #tpu.memory_space<vmem>>, vector<2x32xf32>
    tpu.vector_store %arg3[%c0_8, %c0_9], %11 {strides = array<i32>} : memref<2x32xf32, #tpu.memory_space<vmem>>, vector<2x32xf32>,
    return
  }
}

</mosaic_0001>

<bundles_post_ra>
// kernel: image_model_forward.1
= control target key start
LH: loop header
LB: loop body
LE: loop exit
PB: predicated region body
PF: predicated region fallthrough
CT: control target
= control target key end

     0   :  { %vm91_vm0 = vcmask 293888   ;;  %vm284_vm1 = vcmask 1043456   ;;  %s1617_s0 = inlined_call_operand.vmem [shape: f32[512,36], index: 0, kind: input, shape index: {}]   ;;  %s1618_s1 = inlined_call_operand.vmem [shape: f32[36,32], index: 1, kind: input, shape index: {}]   ;;  %s1619_s2 = inlined_call_operand.vmem [shape: f32[1,32], index: 2, kind: input, shape index: {}]   ;;  %s1620_s3 = inlined_call_operand.hbm [shape: f32[2,32], index: 3, kind: output, shape index: {}]  }
   0x1   :  { %v79_v0 = vld [vmem:[%s1618_s1] sm:$0xff]  ;;  %v80_v1 = vld [vmem:[%s1618_s1 + $0x8] sm:$0xff]  ;;  %v81_v2 = vld [vmem:[%s1618_s1 + $0x10] sm:$0xff] }
   0x2   :  { %v1141_v3 = vpack.c.bf16 %v80_v1, %v79_v0  ;;  %v82_v4 = vld [vmem:[%s1618_s1 + $0x18] sm:$0xff]  ;;  %v15_v5 = vld [vmem:[%s1617_s0] sm:$0xff]  ;;  %v16_v9 = vld [vmem:[%s1617_s0 + $0x8] sm:$0xff] }
   0x3   :  { %v1145_v6 = vpack.c.bf16 %v82_v4, %v81_v2  ;;  %1045 = vmatprep.mubr.msk.f32.mxu0 %vm91_vm0, %v15_v5  ;;  %v47_v7 = vld [vmem:[%s1617_s0 + $0x100] sm:$0xff]  ;;  %v48_v10 = vld [vmem:[%s1617_s0 + $0x108] sm:$0xff]  ;;  %v17_v11 = vld [vmem:[%s1617_s0 + $0x10] sm:$0xff] }
   0x4   :  { %1142 = vmatprep.subr.bf16.mxu0 %v1141_v3  ;;  %1149 = vmatprep.subr.bf16.mxu1 %v1141_v3  ;;  %v83_v8 = vld [vmem:[%s1618_s1 + $0x20] sm:$0xf]  ;;  %v49_v12 = vld [vmem:[%s1617_s0 + $0x110] sm:$0xff]  ;;  %v18_v13 = vld [vmem:[%s1617_s0 + $0x18] sm:$0xff] }
   0x5   :  { %1144 = vmatpush3.bf16.msra.mxu0 %v1141_v3  ;;  %1152 = vmatpush3.bf16.msra.mxu1 %v1141_v3  ;;  %v50_v14 = vld [vmem:[%s1617_s0 + $0x118] sm:$0xff]  ;;  %v19_v15 = vld [vmem:[%s1617_s0 + $0x20] sm:$0xff]  ;;  %v20_v17 = vld [vmem:[%s1617_s0 + $0x28] sm:$0xff] }
   0x6   :  { %1146 = vmatprep.subr.bf16.mxu0 %v1145_v6  ;;  %1150 = vmatprep.subr.bf16.mxu1 %v1145_v6  ;;  %v51_v16 = vld [vmem:[%s1617_s0 + $0x120] sm:$0xff]  ;;  %v52_v18 = vld [vmem:[%s1617_s0 + $0x128] sm:$0xff]  ;;  %v21_v19 = vld [vmem:[%s1617_s0 + $0x30] sm:$0xff] }
   0x7   :  { %1093 = vmatprep.mubr.msk.f32.mxu1 %vm91_vm0, %v47_v7  ;;  %v53_v20 = vld [vmem:[%s1617_s0 + $0x130] sm:$0xff]  ;;  %v22_v21 = vld [vmem:[%s1617_s0 + $0x38] sm:$0xff]  ;;  %v23_v23 = vld [vmem:[%s1617_s0 + $0x40] sm:$0xff] }
   0x8   :  { %v54_v22 = vld [vmem:[%s1617_s0 + $0x138] sm:$0xff]  ;;  %v55_v24 = vld [vmem:[%s1617_s0 + $0x140] sm:$0xff] }
   0x9   :  { %1148 = vmatpush3.bf16.msra.mxu0 %v1145_v6  ;;  %1153 = vmatpush3.bf16.msra.mxu1 %v1145_v6 }
   0xa   :  { %1043 = vmatprep.subr.msk.mxu0 %vm284_vm1, %v83_v8  ;;  %1151 = vmatprep.subr.msk.mxu1 %vm284_vm1, %v83_v8 }
   0xd   :  { %1044 = vmatpush3.msk.msra.mxu0 %vm284_vm1, %v83_v8  ;;  %1154 = vmatpush3.msk.msra.mxu1 %vm284_vm1, %v83_v8 }
   0xe   :  { %1046 = vmatmul.mubr.msk.f32.vlgmr.msra.gmra.mrb[0].mxu0 %vm91_vm0, %v16_v9  ;;  %1094 = vmatmul.mubr.msk.f32.vlgmr.msra.gmra.mrb[0].mxu1 %vm91_vm0, %v48_v10 }
   0xf   :  { %1048 = vmatprep.mubr.msk.f32.mxu0 %vm91_vm0, %v17_v11  ;;  %1096 = vmatprep.mubr.msk.f32.mxu1 %vm91_vm0, %v49_v12 }
  0x12   :  { %1049 = vmatmul.mubr.msk.f32.gmra.mrb[2].mxu0 %vm91_vm0, %v18_v13  ;;  %1097 = vmatmul.mubr.msk.f32.gmra.mrb[2].mxu1 %vm91_vm0, %v50_v14 }
  0x13   :  { %1051 = vmatprep.mubr.msk.f32.mxu0 %vm91_vm0, %v19_v15  ;;  %1099 = vmatprep.mubr.msk.f32.mxu1 %vm91_vm0, %v51_v16 }
  0x16   :  { %1052 = vmatmul.mubr.msk.f32.gmra.mrb[4].mxu0 %vm91_vm0, %v20_v17  ;;  %1100 = vmatmul.mubr.msk.f32.gmra.mrb[4].mxu1 %vm91_vm0, %v52_v18 }
  0x17   :  { %1054 = vmatprep.mubr.msk.f32.mxu0 %vm91_vm0, %v21_v19  ;;  %1102 = vmatprep.mubr.msk.f32.mxu1 %vm91_vm0, %v53_v20 }
  0x18   :  { %8 = vsyncpa [#allocation3], 0  ;;  %v24_v25 = vld [vmem:[%s1617_s0 + $0x48] sm:$0xff]  ;;  %v25_v27 = vld [vmem:[%s1617_s0 + $0x50] sm:$0xff]  ;;  %vm737_vm2 = vcmask 261120   ;;  %vm881_vm3 = vcmask 1041409  }
  0x19   :  { %v56_v26 = vld [vmem:[%s1617_s0 + $0x148] sm:$0xff]  ;;  %v57_v28 = vld [vmem:[%s1617_s0 + $0x150] sm:$0xff]  ;;  %v26_v29 = vld [vmem:[%s1617_s0 + $0x58] sm:$0xff]  ;;  %vm884_vm4 = vcmask 254976  }
  0x1a   :  { %1055 = vmatmul.mubr.msk.f32.gmra.mrb[6].mxu0 %vm91_vm0, %v22_v21  ;;  %1103 = vmatmul.mubr.msk.f32.gmra.mrb[6].mxu1 %vm91_vm0, %v54_v22  ;;  %v58_v30 = vld [vmem:[%s1617_s0 + $0x158] sm:$0xff]  ;;  %v27_v31 = vld [vmem:[%s1617_s0 + $0x60] sm:$0xff]  ;;  %v28_v33 = vld [vmem:[%s1617_s0 + $0x68] sm:$0xff] }
  0x1b   :  { %1057 = vmatprep.mubr.msk.f32.mxu0 %vm91_vm0, %v23_v23  ;;  %1105 = vmatprep.mubr.msk.f32.mxu1 %vm91_vm0, %v55_v24  ;;  %v59_v32 = vld [vmem:[%s1617_s0 + $0x160] sm:$0xff]  ;;  %v60_v34 = vld [vmem:[%s1617_s0 + $0x168] sm:$0xff]  ;;  %v29_v35 = vld [vmem:[%s1617_s0 + $0x70] sm:$0xff] }
  0x1c   :  { %v61_v36 = vld [vmem:[%s1617_s0 + $0x170] sm:$0xff]  ;;  %v30_v37 = vld [vmem:[%s1617_s0 + $0x78] sm:$0xff]  ;;  %v31_v39 = vld [vmem:[%s1617_s0 + $0x80] sm:$0xff] }
  0x1d   :  { %v62_v38 = vld [vmem:[%s1617_s0 + $0x178] sm:$0xff]  ;;  %v63_v40 = vld [vmem:[%s1617_s0 + $0x180] sm:$0xff]  ;;  %v32_v41 = vld [vmem:[%s1617_s0 + $0x88] sm:$0xff] }
  0x1e   :  { %1058 = vmatmul.mubr.msk.f32.gmra.mrb[8].mxu0 %vm91_vm0, %v24_v25  ;;  %1106 = vmatmul.mubr.msk.f32.gmra.mrb[8].mxu1 %vm91_vm0, %v56_v26  ;;  %v64_v42 = vld [vmem:[%s1617_s0 + $0x188] sm:$0xff]  ;;  %v33_v43 = vld [vmem:[%s1617_s0 + $0x90] sm:$0xff]  ;;  %v34_v45 = vld [vmem:[%s1617_s0 + $0x98] sm:$0xff] }
  0x1f   :  { %1060 = vmatprep.mubr.msk.f32.mxu0 %vm91_vm0, %v25_v27  ;;  %1108 = vmatprep.mubr.msk.f32.mxu1 %vm91_vm0, %v57_v28  ;;  %v65_v44 = vld [vmem:[%s1617_s0 + $0x190] sm:$0xff]  ;;  %v66_v46 = vld [vmem:[%s1617_s0 + $0x198] sm:$0xff]  ;;  %v35_v47 = vld [vmem:[%s1617_s0 + $0xa0] sm:$0xff] }
  0x20   :  { %v67_v48 = vld [vmem:[%s1617_s0 + $0x1a0] sm:$0xff]  ;;  %v36_v49 = vld [vmem:[%s1617_s0 + $0xa8] sm:$0xff]  ;;  %v37_v51 = vld [vmem:[%s1617_s0 + $0xb0] sm:$0xff] }
  0x21   :  { %v68_v50 = vld [vmem:[%s1617_s0 + $0x1a8] sm:$0xff]  ;;  %v69_v52 = vld [vmem:[%s1617_s0 + $0x1b0] sm:$0xff]  ;;  %v38_v53 = vld [vmem:[%s1617_s0 + $0xb8] sm:$0xff] }
  0x22   :  { %1061 = vmatmul.mubr.msk.f32.gmra.mrb[10].mxu0 %vm91_vm0, %v26_v29  ;;  %1109 = vmatmul.mubr.msk.f32.gmra.mrb[10].mxu1 %vm91_vm0, %v58_v30  ;;  %v70_v54 = vld [vmem:[%s1617_s0 + $0x1b8] sm:$0xff]  ;;  %v39_v55 = vld [vmem:[%s1617_s0 + $0xc0] sm:$0xff]  ;;  %v40_v57 = vld [vmem:[%s1617_s0 + $0xc8] sm:$0xff] }
  0x23   :  { %1063 = vmatprep.mubr.msk.f32.mxu0 %vm91_vm0, %v27_v31  ;;  %1111 = vmatprep.mubr.msk.f32.mxu1 %vm91_vm0, %v59_v32  ;;  %v71_v56 = vld [vmem:[%s1617_s0 + $0x1c0] sm:$0xff]  ;;  %v72_v58 = vld [vmem:[%s1617_s0 + $0x1c8] sm:$0xff]  ;;  %v41_v59 = vld [vmem:[%s1617_s0 + $0xd0] sm:$0xff] }
  0x24   :  { %v73_v60 = vld [vmem:[%s1617_s0 + $0x1d0] sm:$0xff]  ;;  %v42_v61 = vld [vmem:[%s1617_s0 + $0xd8] sm:$0xff]  ;;  %v43_v63 = vld [vmem:[%s1617_s0 + $0xe0] sm:$0xff] }
  0x25   :  { %v74_v62 = vld [vmem:[%s1617_s0 + $0x1d8] sm:$0xff]  ;;  %v75_v0 = vld [vmem:[%s1617_s0 + $0x1e0] sm:$0xff]  ;;  %v44_v1 = vld [vmem:[%s1617_s0 + $0xe8] sm:$0xff] }
  0x26   :  { %1064 = vmatmul.mubr.msk.f32.gmra.mrb[12].mxu0 %vm91_vm0, %v28_v33  ;;  %1112 = vmatmul.mubr.msk.f32.gmra.mrb[12].mxu1 %vm91_vm0, %v60_v34  ;;  %v76_v2 = vld [vmem:[%s1617_s0 + $0x1e8] sm:$0xff]  ;;  %v45_v3 = vld [vmem:[%s1617_s0 + $0xf0] sm:$0xff]  ;;  %v46_v5 = vld [vmem:[%s1617_s0 + $0xf8] sm:$0xff] }
  0x27   :  { %1066 = vmatprep.mubr.msk.f32.mxu0 %vm91_vm0, %v29_v35  ;;  %1114 = vmatprep.mubr.msk.f32.mxu1 %vm91_vm0, %v61_v36  ;;  %v77_v4 = vld [vmem:[%s1617_s0 + $0x1f0] sm:$0xff]  ;;  %v78_v6 = vld [vmem:[%s1617_s0 + $0x1f8] sm:$0xff]  ;;  %v1475_v7 = vld [vmem:[%s1619_s2] ss:$0 sm:$0xff]  ;;  %s1180_s0 = smov [#allocation2]  }
  0x28   :  { %s892_s2 = sshll.u32 %s1180_s0, 4  ;;  %s893_s2 = int_to_ptr.vmem [resolvable:$true] %s892_s2 }
  0x29   :  { %s1156_s12 = scalar_lea.vmem %s893_s2, 32  ;;  %p1161_p1 = scmp.lt.s32.totalorder %s893_s2, %s893_s2 }
  0x2a   :  { %1067 = vmatmul.mubr.msk.f32.gmra.mrb[14].mxu0 %vm91_vm0, %v30_v37  ;;  %1115 = vmatmul.mubr.msk.f32.gmra.mrb[14].mxu1 %vm91_vm0, %v62_v38  ;;  %p1157_p0 = scmp.ne.s32.totalorder %s893_s2, %s1156_s12  ;;  %p1162_p2 = scmp.lt.s32.totalorder %s1156_s12, %s1156_s12 }
  0x2b   :  { %1069 = vmatprep.mubr.msk.f32.mxu0 %vm91_vm0, %v31_v39  ;;  %1117 = vmatprep.mubr.msk.f32.mxu1 %vm91_vm0, %v63_v40 }
  0x2c   :  { %p1163_p3 = por %p1162_p2, %p1161_p1 }
  0x2e   :  { %1070 = vmatmul.mubr.msk.f32.gmra.mrb[16].mxu0 %vm91_vm0, %v32_v41  ;;  %1118 = vmatmul.mubr.msk.f32.gmra.mrb[16].mxu1 %vm91_vm0, %v64_v42  ;;  %p1164_p4 = pnand %p1163_p3, %p1157_p0 }
  0x2f   :  { %1072 = vmatprep.mubr.msk.f32.mxu0 %vm91_vm0, %v33_v43  ;;  %1120 = vmatprep.mubr.msk.f32.mxu1 %vm91_vm0, %v65_v44 }
  0x32   :  { %1073 = vmatmul.mubr.msk.f32.gmra.mrb[18].mxu0 %vm91_vm0, %v34_v45  ;;  %1121 = vmatmul.mubr.msk.f32.gmra.mrb[18].mxu1 %vm91_vm0, %v66_v46 }
  0x33   :  { %1075 = vmatprep.mubr.msk.f32.mxu0 %vm91_vm0, %v35_v47  ;;  %1123 = vmatprep.mubr.msk.f32.mxu1 %vm91_vm0, %v67_v48 }
  0x36   :  { %1076 = vmatmul.mubr.msk.f32.gmra.mrb[20].mxu0 %vm91_vm0, %v36_v49  ;;  %1124 = vmatmul.mubr.msk.f32.gmra.mrb[20].mxu1 %vm91_vm0, %v68_v50 }
  0x37   :  { %1078 = vmatprep.mubr.msk.f32.mxu0 %vm91_vm0, %v37_v51  ;;  %1126 = vmatprep.mubr.msk.f32.mxu1 %vm91_vm0, %v69_v52 }
  0x3a   :  { %1079 = vmatmul.mubr.msk.f32.gmra.mrb[22].mxu0 %vm91_vm0, %v38_v53  ;;  %1127 = vmatmul.mubr.msk.f32.gmra.mrb[22].mxu1 %vm91_vm0, %v70_v54 }
  0x3b   :  { %1081 = vmatprep.mubr.msk.f32.mxu0 %vm91_vm0, %v39_v55  ;;  %1129 = vmatprep.mubr.msk.f32.mxu1 %vm91_vm0, %v71_v56 }
  0x3e   :  { %1082 = vmatmul.mubr.msk.f32.gmra.mrb[24].mxu0 %vm91_vm0, %v40_v57  ;;  %1130 = vmatmul.mubr.msk.f32.gmra.mrb[24].mxu1 %vm91_vm0, %v72_v58 }
  0x3f   :  { %1084 = vmatprep.mubr.msk.f32.mxu0 %vm91_vm0, %v41_v59  ;;  %1132 = vmatprep.mubr.msk.f32.mxu1 %vm91_vm0, %v73_v60 }
  0x42   :  { %1085 = vmatmul.mubr.msk.f32.gmra.mrb[26].mxu0 %vm91_vm0, %v42_v61  ;;  %1133 = vmatmul.mubr.msk.f32.gmra.mrb[26].mxu1 %vm91_vm0, %v74_v62 }
  0x43   :  { %1087 = vmatprep.mubr.msk.f32.mxu0 %vm91_vm0, %v43_v63  ;;  %1135 = vmatprep.mubr.msk.f32.mxu1 %vm91_vm0, %v75_v0 }
  0x46   :  { %1088 = vmatmul.mubr.msk.f32.gmra.mrb[28].mxu0 %vm91_vm0, %v44_v1  ;;  %1136 = vmatmul.mubr.msk.f32.gmra.mrb[28].mxu1 %vm91_vm0, %v76_v2 }
  0x47   :  { %1090 = vmatprep.mubr.msk.f32.mxu0 %vm91_vm0, %v45_v3  ;;  %1138 = vmatprep.mubr.msk.f32.mxu1 %vm91_vm0, %v77_v4 }
  0x4a   :  { %1091 = vmatmul.mubr.msk.f32.gmra.mrb[30].mxu0 %vm91_vm0, %v46_v5  ;;  %1139 = vmatmul.mubr.msk.f32.gmra.mrb[30].mxu1 %vm91_vm0, %v78_v6 }
  0xe1   :  { %v1047_v8 = vpop.f32.mrb[0].mxu0  ;;  %v1095_v9 = vpop.f32.mrb[0].mxu1 }
  0xe2   :  { %v360_v10 = vadd.f32 %v1047_v8, %v1475_v7  ;;  %v520_v11 = vadd.f32 %v1095_v9, %v1475_v7  ;;  %v354_v12 = vpop.f32.mrb[1].mxu0  ;;  %v514_v13 = vpop.f32.mrb[1].mxu1 }
  0xe3   :  { %v355_v14 = vadd.f32 %v1475_v7, %v354_v12  ;;  %v515_v15 = vadd.f32 %v1475_v7, %v514_v13 }
  0xe4   :  { %v674_v16 = vmax.f32 %v360_v10, 0.0  ;;  %v706_v17 = vmax.f32 %v520_v11, 0.0 }
  0xe5   :  { %v673_v18 = vmax.f32 %v355_v14, 0.0  ;;  %v705_v19 = vmax.f32 %v515_v15, 0.0  ;;  %v1050_v20 = vpop.f32.mrb[2].mxu0  ;;  %v1098_v21 = vpop.f32.mrb[2].mxu1 }
  0xe6   :  { %v739_v22 = vsel %vm737_vm2, %v674_v16, 0.0  ;;  %v808_v23 = vsel %vm737_vm2, %v706_v17, 0.0  ;;  %v370_v24 = vadd.f32 %v1050_v20, %v1475_v7  ;;  %v530_v25 = vadd.f32 %v1098_v21, %v1475_v7  ;;  %v364_v26 = vpop.f32.mrb[3].mxu0  ;;  %v524_v27 = vpop.f32.mrb[3].mxu1 }
  0xe7   :  { %v738_v28 = vsel %vm737_vm2, %v673_v18, 0.0  ;;  %v807_v29 = vsel %vm737_vm2, %v705_v19, 0.0  ;;  %v365_v30 = vadd.f32 %v1475_v7, %v364_v26  ;;  %v525_v31 = vadd.f32 %v1475_v7, %v524_v27 }
  0xe8   :  { %v740_v32 = vadd.f32 %v739_v22, %v738_v28  ;;  %v809_v33 = vadd.f32 %v808_v23, %v807_v29  ;;  %v676_v34 = vmax.f32 %v370_v24, 0.0  ;;  %v708_v35 = vmax.f32 %v530_v25, 0.0 }
  0xe9   :  { %v675_v36 = vmax.f32 %v365_v30, 0.0  ;;  %v707_v37 = vmax.f32 %v525_v31, 0.0  ;;  %v1053_v38 = vpop.f32.mrb[4].mxu0  ;;  %v1101_v39 = vpop.f32.mrb[4].mxu1 }
  0xea   :  { %v380_v40 = vadd.f32 %v1053_v38, %v1475_v7  ;;  %v540_v41 = vadd.f32 %v1101_v39, %v1475_v7  ;;  %v374_v42 = vpop.f32.mrb[5].mxu0  ;;  %v534_v43 = vpop.f32.mrb[5].mxu1  ;;  %v743_v48 = vsel %vm737_vm2, %v676_v34, 0.0  ;;  %v812_v49 = vsel %vm737_vm2, %v708_v35, 0.0 }
  0xeb   :  { %v741_v44 = vsel %vm737_vm2, %v675_v36, 0.0  ;;  %v810_v45 = vsel %vm737_vm2, %v707_v37, 0.0  ;;  %v375_v46 = vadd.f32 %v1475_v7, %v374_v42  ;;  %v535_v47 = vadd.f32 %v1475_v7, %v534_v43 }
  0xec   :  { %v742_v50 = vadd.f32 %v741_v44, %v740_v32  ;;  %v811_v51 = vadd.f32 %v810_v45, %v809_v33  ;;  %v678_v52 = vmax.f32 %v380_v40, 0.0  ;;  %v710_v53 = vmax.f32 %v540_v41, 0.0 }
  0xed   :  { %v677_v54 = vmax.f32 %v375_v46, 0.0  ;;  %v709_v55 = vmax.f32 %v535_v47, 0.0  ;;  %v1056_v56 = vpop.f32.mrb[6].mxu0  ;;  %v1104_v57 = vpop.f32.mrb[6].mxu1 }
  0xee   :  { %v744_v58 = vadd.f32 %v743_v48, %v742_v50  ;;  %v813_v59 = vadd.f32 %v812_v49, %v811_v51  ;;  %v384_v60 = vpop.f32.mrb[7].mxu0  ;;  %v544_v61 = vpop.f32.mrb[7].mxu1  ;;  %v390_v0 = vadd.f32 %v1056_v56, %v1475_v7  ;;  %v550_v1 = vadd.f32 %v1104_v57, %v1475_v7 }
  0xef   :  { %v745_v62 = vsel %vm737_vm2, %v677_v54, 0.0  ;;  %v814_v63 = vsel %vm737_vm2, %v709_v55, 0.0  ;;  %v385_v4 = vadd.f32 %v1475_v7, %v384_v60  ;;  %v545_v5 = vadd.f32 %v1475_v7, %v544_v61 }
  0xf0   :  { %v746_v2 = vadd.f32 %v745_v62, %v744_v58  ;;  %v815_v3 = vadd.f32 %v814_v63, %v813_v59  ;;  %v747_v6 = vsel %vm737_vm2, %v678_v52, 0.0  ;;  %v816_v8 = vsel %vm737_vm2, %v710_v53, 0.0 }
  0xf1   :  { %v680_v9 = vmax.f32 %v390_v0, 0.0  ;;  %v712_v10 = vmax.f32 %v550_v1, 0.0  ;;  %v1059_v11 = vpop.f32.mrb[8].mxu0  ;;  %v1107_v12 = vpop.f32.mrb[8].mxu1  ;;  %v679_v13 = vmax.f32 %v385_v4, 0.0  ;;  %v711_v15 = vmax.f32 %v545_v5, 0.0 }
  0xf2   :  { %v748_v14 = vadd.f32 %v747_v6, %v746_v2  ;;  %v817_v16 = vadd.f32 %v816_v8, %v815_v3  ;;  %v394_v17 = vpop.f32.mrb[9].mxu0  ;;  %v554_v18 = vpop.f32.mrb[9].mxu1  ;;  %v400_v21 = vadd.f32 %v1059_v11, %v1475_v7  ;;  %v560_v22 = vadd.f32 %v1107_v12, %v1475_v7 }
  0xf3   :  { %v751_v19 = vsel %vm737_vm2, %v680_v9, 0.0  ;;  %v820_v20 = vsel %vm737_vm2, %v712_v10, 0.0  ;;  %v749_v23 = vsel %vm737_vm2, %v679_v13, 0.0  ;;  %v818_v24 = vsel %vm737_vm2, %v711_v15, 0.0 }
  0xf4   :  { %v395_v25 = vadd.f32 %v1475_v7, %v394_v17  ;;  %v555_v26 = vadd.f32 %v1475_v7, %v554_v18  ;;  %v750_v27 = vadd.f32 %v749_v23, %v748_v14  ;;  %v819_v28 = vadd.f32 %v818_v24, %v817_v16 }
  0xf5   :  { %v682_v29 = vmax.f32 %v400_v21, 0.0  ;;  %v714_v30 = vmax.f32 %v560_v22, 0.0  ;;  %v1062_v31 = vpop.f32.mrb[10].mxu0  ;;  %v1110_v32 = vpop.f32.mrb[10].mxu1 }
  0xf6   :  { %v681_v33 = vmax.f32 %v395_v25, 0.0  ;;  %v713_v34 = vmax.f32 %v555_v26, 0.0  ;;  %v410_v35 = vadd.f32 %v1062_v31, %v1475_v7  ;;  %v570_v36 = vadd.f32 %v1110_v32, %v1475_v7  ;;  %v404_v37 = vpop.f32.mrb[11].mxu0  ;;  %v564_v38 = vpop.f32.mrb[11].mxu1 }
  0xf7   :  { %v752_v39 = vadd.f32 %v751_v19, %v750_v27  ;;  %v821_v40 = vadd.f32 %v820_v20, %v819_v28  ;;  %v755_v41 = vsel %vm737_vm2, %v682_v29, 0.0  ;;  %v824_v42 = vsel %vm737_vm2, %v714_v30, 0.0 }
  0xf8   :  { %v753_v43 = vsel %vm737_vm2, %v681_v33, 0.0  ;;  %v822_v44 = vsel %vm737_vm2, %v713_v34, 0.0  ;;  %v405_v47 = vadd.f32 %v1475_v7, %v404_v37  ;;  %v565_v48 = vadd.f32 %v1475_v7, %v564_v38 }
  0xf9   :  { %v754_v45 = vadd.f32 %v753_v43, %v752_v39  ;;  %v823_v46 = vadd.f32 %v822_v44, %v821_v40  ;;  %v1065_v49 = vpop.f32.mrb[12].mxu0  ;;  %v1113_v50 = vpop.f32.mrb[12].mxu1  ;;  %v684_v51 = vmax.f32 %v410_v35, 0.0  ;;  %v716_v52 = vmax.f32 %v570_v36, 0.0 }
  0xfa   :  { %v420_v53 = vadd.f32 %v1065_v49, %v1475_v7  ;;  %v580_v54 = vadd.f32 %v1113_v50, %v1475_v7  ;;  %v414_v55 = vpop.f32.mrb[13].mxu0  ;;  %v574_v56 = vpop.f32.mrb[13].mxu1  ;;  %v683_v57 = vmax.f32 %v405_v47, 0.0  ;;  %v715_v59 = vmax.f32 %v565_v48, 0.0 }
  0xfb   :  { %v756_v58 = vadd.f32 %v755_v41, %v754_v45  ;;  %v825_v60 = vadd.f32 %v824_v42, %v823_v46  ;;  %v415_v61 = vadd.f32 %v1475_v7, %v414_v55  ;;  %v575_v62 = vadd.f32 %v1475_v7, %v574_v56 }
  0xfc   :  { %v757_v63 = vsel %vm737_vm2, %v683_v57, 0.0  ;;  %v826_v0 = vsel %vm737_vm2, %v715_v59, 0.0  ;;  %v686_v1 = vmax.f32 %v420_v53, 0.0  ;;  %v718_v2 = vmax.f32 %v580_v54, 0.0 }
  0xfd   :  { %v1068_v3 = vpop.f32.mrb[14].mxu0  ;;  %v1116_v4 = vpop.f32.mrb[14].mxu1  ;;  %v759_v5 = vsel %vm737_vm2, %v684_v51, 0.0  ;;  %v828_v6 = vsel %vm737_vm2, %v716_v52, 0.0  ;;  %v758_v8 = vadd.f32 %v757_v63, %v756_v58  ;;  %v827_v9 = vadd.f32 %v826_v0, %v825_v60 }
  0xfe   :  { %v424_v10 = vpop.f32.mrb[15].mxu0  ;;  %v584_v11 = vpop.f32.mrb[15].mxu1  ;;  %v685_v12 = vmax.f32 %v415_v61, 0.0  ;;  %v717_v13 = vmax.f32 %v575_v62, 0.0  ;;  %v430_v14 = vadd.f32 %v1068_v3, %v1475_v7  ;;  %v590_v15 = vadd.f32 %v1116_v4, %v1475_v7 }
  0xff   :  { %v760_v16 = vadd.f32 %v759_v5, %v758_v8  ;;  %v829_v17 = vadd.f32 %v828_v6, %v827_v9  ;;  %v425_v18 = vadd.f32 %v1475_v7, %v424_v10  ;;  %v585_v19 = vadd.f32 %v1475_v7, %v584_v11 }
 0x100   :  { %v763_v20 = vsel %vm737_vm2, %v686_v1, 0.0  ;;  %v832_v21 = vsel %vm737_vm2, %v718_v2, 0.0  ;;  %v761_v22 = vsel %vm737_vm2, %v685_v12, 0.0  ;;  %v830_v23 = vsel %vm737_vm2, %v717_v13, 0.0 }
 0x101   :  { %v1071_v24 = vpop.f32.mrb[16].mxu0  ;;  %v1119_v25 = vpop.f32.mrb[16].mxu1  ;;  %v762_v26 = vadd.f32 %v761_v22, %v760_v16  ;;  %v831_v27 = vadd.f32 %v830_v23, %v829_v17  ;;  %v687_v28 = vmax.f32 %v425_v18, 0.0  ;;  %v719_v29 = vmax.f32 %v585_v19, 0.0 }
 0x102   :  { %v434_v30 = vpop.f32.mrb[17].mxu0  ;;  %v594_v31 = vpop.f32.mrb[17].mxu1  ;;  %v688_v32 = vmax.f32 %v430_v14, 0.0  ;;  %v720_v33 = vmax.f32 %v590_v15, 0.0  ;;  %v440_v34 = vadd.f32 %v1071_v24, %v1475_v7  ;;  %v600_v35 = vadd.f32 %v1119_v25, %v1475_v7 }
 0x103   :  { %v764_v36 = vadd.f32 %v763_v20, %v762_v26  ;;  %v765_v37 = vsel %vm737_vm2, %v687_v28, 0.0  ;;  %v833_v38 = vadd.f32 %v832_v21, %v831_v27  ;;  %v834_v39 = vsel %vm737_vm2, %v719_v29, 0.0 }
 0x104   :  { %v690_v40 = vmax.f32 %v440_v34, 0.0  ;;  %v722_v41 = vmax.f32 %v600_v35, 0.0  ;;  %v435_v42 = vadd.f32 %v1475_v7, %v434_v30  ;;  %v595_v43 = vadd.f32 %v1475_v7, %v594_v31 }
 0x105   :  { %v1074_v44 = vpop.f32.mrb[18].mxu0  ;;  %v1122_v45 = vpop.f32.mrb[18].mxu1  ;;  %v766_v46 = vadd.f32 %v765_v37, %v764_v36  ;;  %v835_v47 = vadd.f32 %v834_v39, %v833_v38  ;;  %v767_v52 = vsel %vm737_vm2, %v688_v32, 0.0  ;;  %v836_v53 = vsel %vm737_vm2, %v720_v33, 0.0 }
 0x106   :  { %v450_v48 = vadd.f32 %v1074_v44, %v1475_v7  ;;  %v610_v49 = vadd.f32 %v1122_v45, %v1475_v7  ;;  %v444_v50 = vpop.f32.mrb[19].mxu0  ;;  %v604_v51 = vpop.f32.mrb[19].mxu1  ;;  %v689_v54 = vmax.f32 %v435_v42, 0.0  ;;  %v721_v55 = vmax.f32 %v595_v43, 0.0 }
 0x107   :  { %v768_v56 = vadd.f32 %v767_v52, %v766_v46  ;;  %v837_v57 = vadd.f32 %v836_v53, %v835_v47  ;;  %v445_v62 = vadd.f32 %v1475_v7, %v444_v50  ;;  %v605_v63 = vadd.f32 %v1475_v7, %v604_v51 }
 0x108   :  { %v692_v58 = vmax.f32 %v450_v48, 0.0  ;;  %v724_v59 = vmax.f32 %v610_v49, 0.0  ;;  %v769_v60 = vsel %vm737_vm2, %v689_v54, 0.0  ;;  %v838_v61 = vsel %vm737_vm2, %v721_v55, 0.0 }
 0x109   :  { %v1077_v0 = vpop.f32.mrb[20].mxu0  ;;  %v1125_v1 = vpop.f32.mrb[20].mxu1  ;;  %v771_v2 = vsel %vm737_vm2, %v690_v40, 0.0  ;;  %v840_v3 = vsel %vm737_vm2, %v722_v41, 0.0  ;;  %v770_v4 = vadd.f32 %v769_v60, %v768_v56  ;;  %v839_v5 = vadd.f32 %v838_v61, %v837_v57 }
 0x10a   :  { %v454_v6 = vpop.f32.mrb[21].mxu0  ;;  %v614_v8 = vpop.f32.mrb[21].mxu1  ;;  %v691_v9 = vmax.f32 %v445_v62, 0.0  ;;  %v723_v10 = vmax.f32 %v605_v63, 0.0  ;;  %v460_v11 = vadd.f32 %v1077_v0, %v1475_v7  ;;  %v620_v12 = vadd.f32 %v1125_v1, %v1475_v7 }
 0x10b   :  { %v772_v13 = vadd.f32 %v771_v2, %v770_v4  ;;  %v841_v14 = vadd.f32 %v840_v3, %v839_v5  ;;  %v455_v15 = vadd.f32 %v1475_v7, %v454_v6  ;;  %v615_v16 = vadd.f32 %v1475_v7, %v614_v8 }
 0x10c   :  { %v775_v17 = vsel %vm737_vm2, %v692_v58, 0.0  ;;  %v844_v18 = vsel %vm737_vm2, %v724_v59, 0.0  ;;  %v773_v19 = vsel %vm737_vm2, %v691_v9, 0.0  ;;  %v842_v20 = vsel %vm737_vm2, %v723_v10, 0.0 }
 0x10d   :  { %v1080_v21 = vpop.f32.mrb[22].mxu0  ;;  %v1128_v22 = vpop.f32.mrb[22].mxu1  ;;  %v774_v23 = vadd.f32 %v773_v19, %v772_v13  ;;  %v843_v24 = vadd.f32 %v842_v20, %v841_v14  ;;  %v693_v25 = vmax.f32 %v455_v15, 0.0  ;;  %v725_v26 = vmax.f32 %v615_v16, 0.0 }
 0x10e   :  { %v464_v27 = vpop.f32.mrb[23].mxu0  ;;  %v624_v28 = vpop.f32.mrb[23].mxu1  ;;  %v694_v29 = vmax.f32 %v460_v11, 0.0  ;;  %v726_v30 = vmax.f32 %v620_v12, 0.0  ;;  %v470_v31 = vadd.f32 %v1080_v21, %v1475_v7  ;;  %v630_v32 = vadd.f32 %v1128_v22, %v1475_v7 }
 0x10f   :  { %v776_v33 = vadd.f32 %v775_v17, %v774_v23  ;;  %v777_v34 = vsel %vm737_vm2, %v693_v25, 0.0  ;;  %v845_v35 = vadd.f32 %v844_v18, %v843_v24  ;;  %v846_v36 = vsel %vm737_vm2, %v725_v26, 0.0 }
 0x110   :  { %v696_v37 = vmax.f32 %v470_v31, 0.0  ;;  %v728_v38 = vmax.f32 %v630_v32, 0.0  ;;  %v465_v39 = vadd.f32 %v1475_v7, %v464_v27  ;;  %v625_v40 = vadd.f32 %v1475_v7, %v624_v28 }
 0x111   :  { %v1083_v41 = vpop.f32.mrb[24].mxu0  ;;  %v1131_v42 = vpop.f32.mrb[24].mxu1  ;;  %v778_v43 = vadd.f32 %v777_v34, %v776_v33  ;;  %v847_v44 = vadd.f32 %v846_v36, %v845_v35  ;;  %v779_v49 = vsel %vm737_vm2, %v694_v29, 0.0  ;;  %v848_v50 = vsel %vm737_vm2, %v726_v30, 0.0 }
 0x112   :  { %v480_v45 = vadd.f32 %v1083_v41, %v1475_v7  ;;  %v640_v46 = vadd.f32 %v1131_v42, %v1475_v7  ;;  %v474_v47 = vpop.f32.mrb[25].mxu0  ;;  %v634_v48 = vpop.f32.mrb[25].mxu1  ;;  %v695_v51 = vmax.f32 %v465_v39, 0.0  ;;  %v727_v52 = vmax.f32 %v625_v40, 0.0 }
 0x113   :  { %v783_v53 = vsel %vm737_vm2, %v696_v37, 0.0  ;;  %v852_v54 = vsel %vm737_vm2, %v728_v38, 0.0  ;;  %v780_v55 = vadd.f32 %v779_v49, %v778_v43  ;;  %v849_v56 = vadd.f32 %v848_v50, %v847_v44 }
 0x114   :  { %v781_v57 = vsel %vm737_vm2, %v695_v51, 0.0  ;;  %v850_v58 = vsel %vm737_vm2, %v727_v52, 0.0  ;;  %v475_v59 = vadd.f32 %v1475_v7, %v474_v47  ;;  %v635_v60 = vadd.f32 %v1475_v7, %v634_v48 }
 0x115   :  { %v1086_v61 = vpop.f32.mrb[26].mxu0  ;;  %v1134_v62 = vpop.f32.mrb[26].mxu1  ;;  %v782_v63 = vadd.f32 %v781_v57, %v780_v55  ;;  %v851_v0 = vadd.f32 %v850_v58, %v849_v56  ;;  %v698_v1 = vmax.f32 %v480_v45, 0.0  ;;  %v730_v2 = vmax.f32 %v640_v46, 0.0 }
 0x116   :  { %v484_v3 = vpop.f32.mrb[27].mxu0  ;;  %v644_v4 = vpop.f32.mrb[27].mxu1  ;;  %v697_v5 = vmax.f32 %v475_v59, 0.0  ;;  %v729_v6 = vmax.f32 %v635_v60, 0.0  ;;  %v490_v8 = vadd.f32 %v1086_v61, %v1475_v7  ;;  %v650_v9 = vadd.f32 %v1134_v62, %v1475_v7 }
 0x117   :  { %v784_v10 = vadd.f32 %v783_v53, %v782_v63  ;;  %v853_v11 = vadd.f32 %v852_v54, %v851_v0  ;;  %v485_v12 = vadd.f32 %v1475_v7, %v484_v3  ;;  %v645_v13 = vadd.f32 %v1475_v7, %v644_v4 }
 0x118   :  { %v785_v14 = vsel %vm737_vm2, %v697_v5, 0.0  ;;  %v854_v15 = vsel %vm737_vm2, %v729_v6, 0.0  ;;  %v700_v16 = vmax.f32 %v490_v8, 0.0  ;;  %v732_v17 = vmax.f32 %v650_v9, 0.0 }
 0x119   :  { %v1089_v18 = vpop.f32.mrb[28].mxu0  ;;  %v1137_v19 = vpop.f32.mrb[28].mxu1  ;;  %v786_v20 = vadd.f32 %v785_v14, %v784_v10  ;;  %v855_v21 = vadd.f32 %v854_v15, %v853_v11  ;;  %v699_v22 = vmax.f32 %v485_v12, 0.0  ;;  %v731_v23 = vmax.f32 %v645_v13, 0.0 }
 0x11a   :  { %v494_v24 = vpop.f32.mrb[29].mxu0  ;;  %v654_v25 = vpop.f32.mrb[29].mxu1  ;;  %v787_v26 = vsel %vm737_vm2, %v698_v1, 0.0  ;;  %v856_v27 = vsel %vm737_vm2, %v730_v2, 0.0  ;;  %v500_v28 = vadd.f32 %v1089_v18, %v1475_v7  ;;  %v660_v29 = vadd.f32 %v1137_v19, %v1475_v7 }
 0x11b   :  { %v788_v30 = vadd.f32 %v787_v26, %v786_v20  ;;  %v789_v31 = vsel %vm737_vm2, %v699_v22, 0.0  ;;  %v857_v32 = vadd.f32 %v856_v27, %v855_v21  ;;  %v858_v33 = vsel %vm737_vm2, %v731_v23, 0.0 }
 0x11c   :  { %v791_v34 = vsel %vm737_vm2, %v700_v16, 0.0  ;;  %v860_v35 = vsel %vm737_vm2, %v732_v17, 0.0  ;;  %v495_v36 = vadd.f32 %v1475_v7, %v494_v24  ;;  %v655_v37 = vadd.f32 %v1475_v7, %v654_v25 }
 0x11d   :  { %v1092_v38 = vpop.f32.mrb[30].mxu0  ;;  %v1140_v39 = vpop.f32.mrb[30].mxu1  ;;  %v790_v40 = vadd.f32 %v789_v31, %v788_v30  ;;  %v859_v41 = vadd.f32 %v858_v33, %v857_v32  ;;  %v702_v42 = vmax.f32 %v500_v28, 0.0  ;;  %v734_v43 = vmax.f32 %v660_v29, 0.0 }
 0x11e   :  { %v504_v44 = vpop.f32.mrb[31].mxu0  ;;  %v664_v45 = vpop.f32.mrb[31].mxu1  ;;  %v701_v46 = vmax.f32 %v495_v36, 0.0  ;;  %v733_v47 = vmax.f32 %v655_v37, 0.0  ;;  %v510_v48 = vadd.f32 %v1092_v38, %v1475_v7  ;;  %v670_v49 = vadd.f32 %v1140_v39, %v1475_v7 }
 0x11f   :  { %v792_v50 = vadd.f32 %v791_v34, %v790_v40  ;;  %v861_v51 = vadd.f32 %v860_v35, %v859_v41  ;;  %v505_v54 = vadd.f32 %v1475_v7, %v504_v44  ;;  %v665_v55 = vadd.f32 %v1475_v7, %v664_v45 }
 0x120   :  { %v793_v52 = vsel %vm737_vm2, %v701_v46, 0.0  ;;  %v862_v53 = vsel %vm737_vm2, %v733_v47, 0.0  ;;  %v795_v56 = vsel %vm737_vm2, %v702_v42, 0.0  ;;  %v864_v57 = vsel %vm737_vm2, %v734_v43, 0.0 }
 0x121   :  { %v794_v58 = vadd.f32 %v793_v52, %v792_v50  ;;  %v863_v59 = vadd.f32 %v862_v53, %v861_v51  ;;  %v704_v60 = vmax.f32 %v510_v48, 0.0  ;;  %v736_v61 = vmax.f32 %v670_v49, 0.0 }
 0x122   :  { %v703_v62 = vmax.f32 %v505_v54, 0.0  ;;  %v735_v63 = vmax.f32 %v665_v55, 0.0 }
 0x123   :  { %v796_v0 = vadd.f32 %v795_v56, %v794_v58  ;;  %v865_v1 = vadd.f32 %v864_v57, %v863_v59  ;;  %v799_v7 = vsel %vm737_vm2, %v704_v60, 0.0  ;;  %v868_v6 = vsel %vm737_vm2, %v736_v61, 0.0 }
 0x124   :  { %v797_v2 = vsel %vm737_vm2, %v703_v62, 0.0  ;;  %v866_v3 = vsel %vm737_vm2, %v735_v63, 0.0 }
 0x125   :  { %v798_v4 = vadd.f32 %v797_v2, %v796_v0  ;;  %v867_v5 = vadd.f32 %v866_v3, %v865_v1 }
 0x127   :  { %v800_v8 = vadd.f32 %v799_v7, %v798_v4  ;;  %v869_v9 = vadd.f32 %v868_v6, %v867_v5 }
 0x129   :  { %v801_v10 = vrot.slane %v800_v8, 4  ;;  %v870_v11 = vrot.slane %v869_v9, 4 }
 0x12b   :  { %v802_v12 = vadd.f32 %v801_v10, %v800_v8  ;;  %v871_v13 = vadd.f32 %v870_v11, %v869_v9 }
 0x12d   :  { %v803_v14 = vrot.slane %v802_v12, 2  ;;  %v872_v15 = vrot.slane %v871_v13, 2 }
 0x12f   :  { %v804_v16 = vadd.f32 %v803_v14, %v802_v12  ;;  %v873_v17 = vadd.f32 %v872_v15, %v871_v13 }
 0x131   :  { %v805_v18 = vrot.slane %v804_v16, 1  ;;  %v874_v19 = vrot.slane %v873_v17, 1 }
 0x133   :  { %v806_v20 = vadd.f32 %v805_v18, %v804_v16  ;;  %v875_v21 = vadd.f32 %v874_v19, %v873_v17 }
 0x135   :  { %v877_v22 = vmul.f32 0.00390625, %v806_v20  ;;  %v878_v23 = vmul.f32 0.00390625, %v875_v21 }
 0x137   :  { %v882_v24 = vsel %vm881_vm3, %v878_v23, %v877_v22 }
 0x138   :  { %885 = vst.msk [vmem:[#allocation2] sm:$0x3] %vm884_vm4, %v882_v24 }
 0x139   :  { %1167 = shalt.err (!%p1164_p4)
}
 0x13a   :  { %s1168_s15 = scalar_lea.hbm %s1620_s3, 32 }
 0x13b   :  { %p1169_p5 = scmp.ne.s32.totalorder %s1620_s3, %s1168_s15  ;;  %p1172_p6 = scmp.lt.u32.totalorder %s1168_s15, %s1620_s3 }
 0x13d   :  { %p1174_p7 = pnand %p1172_p6, %p1169_p5 }
 0x13f   :  { %1177 = shalt.err (!%p1174_p7)
}
 0x140   :  { %895 = dma.vmem_to_hbm [thread:$0]  %s893_s2, 32, %s1620_s3, [#allocation3]  }
 0x141   :  { %1178 = dma.done.wait [#allocation3], 32  }
 0x142   :  { %1179 = vsyncadd [#allocation3], 4294967264 }
 0x143   :  { %899 = vsyncpa [#allocation3], 1 }

</bundles_post_ra>
